<compile_context>
chip_gen: v6e
topology: v6e:2x2x1
jax: 0.10.0
libtpu: 0.0.40
codegen_flags: <defaults>
</compile_context>

<pallas_src>
import jax
import jax.numpy as jnp
import numpy as np
from jax.experimental import pallas as pl
from jax.experimental.pallas import tpu as pltpu


def _pre_extraction_kernel(
    x_ref,                      # [M, D] input rows (M = bb*n*s), f32
    wt_ref, bt_ref,             # transfer conv (BN folded): [C, D] f32, [C, 1] f32
    w1_ref, b1_ref,             # res-block net1 (BN folded): [C, C] bf16, [C, 1] f32
    w2_ref, b2_ref,             # res-block net2 (BN folded): [C, C] bf16, [C, 1] f32
    out_ref,                    # [bb, C, n] pooled output block
):
    m, _ = x_ref.shape
    bb, c, n = out_ref.shape
    s = m // (bb * n)

    x = x_ref[...]                                              # [M, D] f32

    # ---- transfer: Conv1d(k=1) + BN (folded) -> ReLU ----
    # h1^T = W_t @ x^T, expressed as an NT matmul (contract D on both operands)
    # so the input never needs an explicit transpose.  Result is lane-dense
    # [C, M] with C on sublanes.
    h1 = jax.lax.dot_general(
        wt_ref[...], x,
        dimension_numbers=(((1,), (1,)), ((), ())),
        preferred_element_type=jnp.float32)                     # [C, M] f32
    h1 = jnp.maximum(h1 + bt_ref[...], 0.0)

    # ---- ConvBNReLURes1D (groups=1, res_expansion=1) ----
    # net1: Conv -> BN (folded) -> ReLU    (bf16 operands, f32 accumulation)
    h2 = jnp.dot(w1_ref[...], h1.astype(jnp.bfloat16),
                 preferred_element_type=jnp.float32) + b1_ref[...]
    h2 = jnp.maximum(h2, 0.0)                                   # [C, M] f32

    # net2: Conv -> BN (folded), no activation
    h3 = jnp.dot(w2_ref[...], h2.astype(jnp.bfloat16),
                 preferred_element_type=jnp.float32) + b2_ref[...]

    # residual add + ReLU (h1 kept in f32 for the residual)
    h = jnp.maximum(h3 + h1, 0.0)                               # [C, M] f32

    # ---- adaptive_max_pool1d(., 1): per-group max over s ----
    # Move rows back to sublanes so the s-reduction is a sublane reduce and the
    # row-splitting reshapes are tile-aligned (s % 8 == 0, n*s % 8 == 0).
    ht = h.T                                                    # [M, C]
    pooled = jnp.max(ht.reshape(bb * n, s, c), axis=1)          # [bb*n, C]

    # Write the (b, C, n) output directly (folds the module's final
    # reshape + permute into the kernel); bb is tiny so a static loop of small
    # 2-D transposes is enough.
    for bi in range(bb):
        blk = pooled[bi * n:(bi + 1) * n, :]                    # [n, C]
        out_ref[bi, :, :] = blk.T.astype(out_ref.dtype)         # [C, n]


def _fold_params(p, eps=1e-5):
    """Fold BN (eval mode, running stats) into conv weight/bias.

    Weights stay in torch Conv1d orientation [Cout, Cin]; the transfer conv
    weight stays f32 (used in the NT matmul), res-block weights go to bf16.
    Biases stay f32 as [Cout, 1] columns (broadcast over the lane/M axis).
    """
    def fold(w, bias, gamma, beta, mean, var, wdtype):
        scale = gamma / jnp.sqrt(var + eps)                          # [Cout]
        w_f = (w * scale[:, None]).astype(wdtype)                    # [Cout, Cin]
        b_f = (((bias - mean) * scale + beta)
               .astype(jnp.float32))[:, None]                        # [Cout, 1]
        return w_f, b_f

    wt, bt = fold(p["wt"], p["bt"], p["gt"], p["bet"], p["mt"], p["vt"], jnp.float32)
    w1, b1 = fold(p["w1"], p["b1"], p["g1"], p["be1"], p["m1"], p["v1"], jnp.bfloat16)
    w2, b2 = fold(p["w2"], p["b2"], p["g2"], p["be2"], p["m2"], p["v2"], jnp.bfloat16)
    return wt, bt, w1, b1, w2, b2


def pre_extraction_forward(x, params, *, num_blocks=1):
    """x: [b, n, s, d]  ->  out: [b, out_channels, n]  (matches PyTorch module).

    num_blocks=1 (default) runs the whole batch in a single grid step (best on
    single-TensorCore v5e/v6e at these sizes).  num_blocks=2 splits the batch
    across grid steps (useful on v7x only when per-step work >> step prologue).
    """
    b, n, s, d = x.shape
    c = params["wt"].shape[0]
    assert params["wt"].shape[1] == d, "in_channels mismatch"
    assert s % 8 == 0, "pooling reshape assumes s is a multiple of the f32 sublane tile (8)"

    if b % num_blocks != 0:
        num_blocks = 1
    bb = b // num_blocks                                 # batch rows per grid step

    # [b, n, s, d] -> [b*n*s, d]: free reshape, channels stay on lanes.
    xg = x.reshape(b * n * s, d)

    weight_args = _fold_params(params)

    def wspec(a):
        return pl.BlockSpec(a.shape, lambda i: (0,) * a.ndim)   # grid-invariant

    out = pl.pallas_call(
        _pre_extraction_kernel,
        out_shape=jax.ShapeDtypeStruct((b, c, n), jnp.float32),
        grid_spec=pl.GridSpec(
            grid=(num_blocks,),
            in_specs=[pl.BlockSpec((bb * n * s, d), lambda i: (i, 0))]
            + [wspec(a) for a in weight_args],
            out_specs=pl.BlockSpec((bb, c, n), lambda i: (i, 0, 0)),
        ),
        compiler_params=pltpu.CompilerParams(
            dimension_semantics=("parallel",),
        ),
    )(xg, *weight_args)

    return out                                            # already [b, c, n]


def make_params(key, in_channels, out_channels):
    """Deterministic synthetic params with nonzero BN running stats."""
    ks = jax.random.split(key, 18)

    def bn(k0, k1, k2, k3, ch):
        gamma = 1.0 + 0.1 * jax.random.normal(k0, (ch,), jnp.float32)
        beta = 0.1 * jax.random.normal(k1, (ch,), jnp.float32)
        mean = 0.1 * jax.random.normal(k2, (ch,), jnp.float32)
        var = jax.random.uniform(k3, (ch,), jnp.float32, minval=0.5, maxval=1.5)
        return gamma, beta, mean, var

    gt, bet, mt, vt = bn(ks[2], ks[3], ks[4], ks[5], out_channels)
    g1, be1, m1, v1 = bn(ks[8], ks[9], ks[10], ks[11], out_channels)
    g2, be2, m2, v2 = bn(ks[14], ks[15], ks[16], ks[17], out_channels)

    return dict(
        # conv weights in torch orientation [Cout, Cin] (kernel size 1 squeezed)
        wt=0.1 * jax.random.normal(ks[0], (out_channels, in_channels), jnp.float32),
        bt=0.1 * jax.random.normal(ks[1], (out_channels,), jnp.float32),
        gt=gt, bet=bet, mt=mt, vt=vt,
        w1=0.1 * jax.random.normal(ks[6], (out_channels, out_channels), jnp.float32),
        b1=0.1 * jax.random.normal(ks[7], (out_channels,), jnp.float32),
        g1=g1, be1=be1, m1=m1, v1=v1,
        w2=0.1 * jax.random.normal(ks[12], (out_channels, out_channels), jnp.float32),
        b2=0.1 * jax.random.normal(ks[13], (out_channels,), jnp.float32),
        g2=g2, be2=be2, m2=m2, v2=v2,
    )


def pre_extraction_reference(x, p, eps=1e-5):
    """Pure-JAX f32 reference of the same forward pass for validation."""
    b, n, s, d = x.shape
    xg = x.reshape(b * n, s, d)

    def conv_bn(h, w, bias, gamma, beta, mean, var):
        y = jnp.einsum("gsc,oc->gso", h, w) + bias
        return (y - mean) * (gamma / jnp.sqrt(var + eps)) + beta

    h1 = jnp.maximum(conv_bn(xg, p["wt"], p["bt"], p["gt"], p["bet"], p["mt"], p["vt"]), 0.0)
    h2 = jnp.maximum(conv_bn(h1, p["w1"], p["b1"], p["g1"], p["be1"], p["m1"], p["v1"]), 0.0)
    h3 = conv_bn(h2, p["w2"], p["b2"], p["g2"], p["be2"], p["m2"], p["v2"])
    h = jnp.maximum(h3 + h1, 0.0)
    pooled = jnp.max(h, axis=1)                            # [b*n, c]
    return jnp.transpose(pooled.reshape(b, n, -1), (0, 2, 1))


if __name__ == "__main__":
    # PreExtraction(channels=4, out_channels=32, use_xyz=True)
    channels = 4
    out_channels = 32
    in_channels = 3 + 2 * channels                         # = 11
    b, n, s = 2, 8, 16                                     # x: [b, g, k, d] = [2, 8, 16, 11]

    key = jax.random.PRNGKey(0)
    kx, kp = jax.random.split(key)
    x = jax.random.normal(kx, (b, n, s, in_channels), jnp.float32)
    params = make_params(kp, in_channels, out_channels)

    out = jax.block_until_ready(pre_extraction_forward(x, params))
    ref = jax.block_until_ready(pre_extraction_reference(x, params))

    assert out.shape == (b, out_channels, n), out.shape
    # bf16 operands in the two res-block matmuls (f32 accumulation) -> compare
    # against the f32 reference loosely.
    np.testing.assert_allclose(np.asarray(out), np.asarray(ref), rtol=2e-2, atol=2e-2)
    print("KERNEL_OK")
</pallas_src>

<mosaic_0001>
module attributes {stable_mosaic.version = 11 : i64} {
  func.func @_pre_extraction_kernel(%arg0: i32, %arg1: memref<256x11xf32, #tpu.memory_space<vmem>>, %arg2: memref<32x11xf32, #tpu.memory_space<vmem>>, %arg3: memref<32x1xf32, #tpu.memory_space<vmem>>, %arg4: memref<32x32xbf16, #tpu.memory_space<vmem>>, %arg5: memref<32x1xf32, #tpu.memory_space<vmem>>, %arg6: memref<32x32xbf16, #tpu.memory_space<vmem>>, %arg7: memref<32x1xf32, #tpu.memory_space<vmem>>, %arg8: memref<2x32x8xf32, #tpu.memory_space<vmem>>) attributes {dimension_semantics = [#tpu.dimension_semantics<parallel>], iteration_bounds = array<i64: 1>, scalar_prefetch = 0 : i64, scratch_operands = 0 : i64, tpu.core_type = #tpu.core_type<tc>, window_params = [{transform_indices = @transform_0, window_bounds = array<i64: 256, 11>}, {pipeline_mode = #tpu.pipeline_mode<synchronous>, transform_indices = @transform_1, window_bounds = array<i64: 32, 11>}, {pipeline_mode = #tpu.pipeline_mode<synchronous>, transform_indices = @transform_2, window_bounds = array<i64: 32, 1>}, {pipeline_mode = #tpu.pipeline_mode<synchronous>, transform_indices = @transform_3, window_bounds = array<i64: 32, 32>}, {pipeline_mode = #tpu.pipeline_mode<synchronous>, transform_indices = @transform_4, window_bounds = array<i64: 32, 1>}, {pipeline_mode = #tpu.pipeline_mode<synchronous>, transform_indices = @transform_5, window_bounds = array<i64: 32, 32>}, {pipeline_mode = #tpu.pipeline_mode<synchronous>, transform_indices = @transform_6, window_bounds = array<i64: 32, 1>}, {transform_indices = @transform_7, window_bounds = array<i64: 2, 32, 8>}]} {
    %c0 = arith.constant 0 : index
    %c0_0 = arith.constant 0 : index
    %0 = vector.load %arg1[%c0, %c0_0] : memref<256x11xf32, #tpu.memory_space<vmem>>, vector<256x11xf32>
    %c0_1 = arith.constant 0 : index
    %c0_2 = arith.constant 0 : index
    %1 = vector.load %arg2[%c0_1, %c0_2] : memref<32x11xf32, #tpu.memory_space<vmem>>, vector<32x11xf32>
    %cst = arith.constant dense<0.000000e+00> : vector<32x256xf32>
    %2 = tpu.matmul %1, %0, %cst {dimension_numbers = #tpu.dot_dimension_numbers<[1], [1], [0], [0], [0, 0, 1, 0], [], []>} : vector<32x11xf32>, vector<256x11xf32>, vector<32x256xf32> -> vector<32x256xf32>
    %c0_3 = arith.constant 0 : index
    %c0_4 = arith.constant 0 : index
    %3 = vector.load %arg3[%c0_3, %c0_4] : memref<32x1xf32, #tpu.memory_space<vmem>>, vector<32x1xf32>
    %4 = vector.broadcast %3 : vector<32x1xf32> to vector<32x256xf32>
    %5 = arith.addf %2, %4 : vector<32x256xf32>
    %cst_5 = arith.constant 0.000000e+00 : f32
    %6 = vector.broadcast %cst_5 : f32 to vector<32x256xf32>
    %7 = arith.maximumf %5, %6 : vector<32x256xf32>
    %c0_6 = arith.constant 0 : index
    %c0_7 = arith.constant 0 : index
    %8 = vector.load %arg4[%c0_6, %c0_7] : memref<32x32xbf16, #tpu.memory_space<vmem>>, vector<32x32xbf16>
    %9 = arith.truncf %7 : vector<32x256xf32> to vector<32x256xbf16>
    %cst_8 = arith.constant dense<0.000000e+00> : vector<32x256xf32>
    %10 = tpu.matmul %8, %9, %cst_8 {dimension_numbers = #tpu.dot_dimension_numbers<[1], [0], [0], [1], [0, 0, 1, 1], [], []>} : vector<32x32xbf16>, vector<32x256xbf16>, vector<32x256xf32> -> vector<32x256xf32>
    %c0_9 = arith.constant 0 : index
    %c0_10 = arith.constant 0 : index
    %11 = vector.load %arg5[%c0_9, %c0_10] : memref<32x1xf32, #tpu.memory_space<vmem>>, vector<32x1xf32>
    %12 = vector.broadcast %11 : vector<32x1xf32> to vector<32x256xf32>
    %13 = arith.addf %10, %12 : vector<32x256xf32>
    %cst_11 = arith.constant 0.000000e+00 : f32
    %14 = vector.broadcast %cst_11 : f32 to vector<32x256xf32>
    %15 = arith.maximumf %13, %14 : vector<32x256xf32>
    %c0_12 = arith.constant 0 : index
    %c0_13 = arith.constant 0 : index
    %16 = vector.load %arg6[%c0_12, %c0_13] : memref<32x32xbf16, #tpu.memory_space<vmem>>, vector<32x32xbf16>
    %17 = arith.truncf %15 : vector<32x256xf32> to vector<32x256xbf16>
    %cst_14 = arith.constant dense<0.000000e+00> : vector<32x256xf32>
    %18 = tpu.matmul %16, %17, %cst_14 {dimension_numbers = #tpu.dot_dimension_numbers<[1], [0], [0], [1], [0, 0, 1, 1], [], []>} : vector<32x32xbf16>, vector<32x256xbf16>, vector<32x256xf32> -> vector<32x256xf32>
    %c0_15 = arith.constant 0 : index
    %c0_16 = arith.constant 0 : index
    %19 = vector.load %arg7[%c0_15, %c0_16] : memref<32x1xf32, #tpu.memory_space<vmem>>, vector<32x1xf32>
    %20 = vector.broadcast %19 : vector<32x1xf32> to vector<32x256xf32>
    %21 = arith.addf %18, %20 : vector<32x256xf32>
    %22 = arith.addf %21, %7 : vector<32x256xf32>
    %cst_17 = arith.constant 0.000000e+00 : f32
    %23 = vector.broadcast %cst_17 : f32 to vector<32x256xf32>
    %24 = arith.maximumf %22, %23 : vector<32x256xf32>
    %25 = tpu.transpose %24, [1, 0] : vector<32x256xf32> -> vector<256x32xf32>
    %26 = vector.shape_cast %25 : vector<256x32xf32> to vector<16x16x32xf32>
    %cst_18 = arith.constant dense<0xFF800000> : vector<16x32xf32>
    %27 = vector.multi_reduction <maximumf>, %26, %cst_18 [1] : vector<16x16x32xf32> to vector<16x32xf32>
    %28 = vector.extract_strided_slice %27 {offsets = [0, 0], sizes = [8, 32], strides = [1, 1]} : vector<16x32xf32> to vector<8x32xf32>
    %29 = tpu.transpose %28, [1, 0] : vector<8x32xf32> -> vector<32x8xf32>
    %c0_19 = arith.constant 0 : index
    %c0_20 = arith.constant 0 : index
    %c0_21 = arith.constant 0 : index
    %30 = vector.load %arg8[%c0_19, %c0_20, %c0_21] : memref<2x32x8xf32, #tpu.memory_space<vmem>>, vector<1x32x8xf32>
    %31 = vector.shape_cast %30 : vector<1x32x8xf32> to vector<32x8xf32>
    %32 = vector.shape_cast %29 : vector<32x8xf32> to vector<1x32x8xf32>
    tpu.vector_store %arg8[%c0_19, %c0_20, %c0_21], %32 {strides = array<i32>} : memref<2x32x8xf32, #tpu.memory_space<vmem>>, vector<1x32x8xf32>,
    %33 = vector.extract_strided_slice %27 {offsets = [8, 0], sizes = [8, 32], strides = [1, 1]} : vector<16x32xf32> to vector<8x32xf32>
    %34 = tpu.transpose %33, [1, 0] : vector<8x32xf32> -> vector<32x8xf32>
    %c1 = arith.constant 1 : index
    %c0_22 = arith.constant 0 : index
    %c0_23 = arith.constant 0 : index
    %35 = vector.load %arg8[%c1, %c0_22, %c0_23] : memref<2x32x8xf32, #tpu.memory_space<vmem>>, vector<1x32x8xf32>
    %36 = vector.shape_cast %35 : vector<1x32x8xf32> to vector<32x8xf32>
    %37 = vector.shape_cast %34 : vector<32x8xf32> to vector<1x32x8xf32>
    tpu.vector_store %arg8[%c1, %c0_22, %c0_23], %37 {strides = array<i32>} : memref<2x32x8xf32, #tpu.memory_space<vmem>>, vector<1x32x8xf32>,
    return
  }
  func.func @transform_0(%arg0: i32) -> (i32, i32) {
    %c0_i32 = arith.constant 0 : i32
    %c0_i32_0 = arith.constant 0 : i32
    return %arg0, %c0_i32 : i32, i32
  }
  func.func @transform_1(%arg0: i32) -> (i32, i32) {
    %c0_i32 = arith.constant 0 : i32
    %c0_i32_0 = arith.constant 0 : i32
    %c0_i32_1 = arith.constant 0 : i32
    return %c0_i32, %c0_i32_0 : i32, i32
  }
  func.func @transform_2(%arg0: i32) -> (i32, i32) {
    %c0_i32 = arith.constant 0 : i32
    %c0_i32_0 = arith.constant 0 : i32
    %c0_i32_1 = arith.constant 0 : i32
    return %c0_i32, %c0_i32_0 : i32, i32
  }
  func.func @transform_3(%arg0: i32) -> (i32, i32) {
    %c0_i32 = arith.constant 0 : i32
    %c0_i32_0 = arith.constant 0 : i32
    %c0_i32_1 = arith.constant 0 : i32
    return %c0_i32, %c0_i32_0 : i32, i32
  }
  func.func @transform_4(%arg0: i32) -> (i32, i32) {
    %c0_i32 = arith.constant 0 : i32
    %c0_i32_0 = arith.constant 0 : i32
    %c0_i32_1 = arith.constant 0 : i32
    return %c0_i32, %c0_i32_0 : i32, i32
  }
  func.func @transform_5(%arg0: i32) -> (i32, i32) {
    %c0_i32 = arith.constant 0 : i32
    %c0_i32_0 = arith.constant 0 : i32
    %c0_i32_1 = arith.constant 0 : i32
    return %c0_i32, %c0_i32_0 : i32, i32
  }
  func.func @transform_6(%arg0: i32) -> (i32, i32) {
    %c0_i32 = arith.constant 0 : i32
    %c0_i32_0 = arith.constant 0 : i32
    %c0_i32_1 = arith.constant 0 : i32
    return %c0_i32, %c0_i32_0 : i32, i32
  }
  func.func @transform_7(%arg0: i32) -> (i32, i32, i32) {
    %c0_i32 = arith.constant 0 : i32
    %c0_i32_0 = arith.constant 0 : i32
    %c0_i32_1 = arith.constant 0 : i32
    return %arg0, %c0_i32, %c0_i32_0 : i32, i32, i32
  }
}

</mosaic_0001>

<bundles_post_ra>
// kernel: tpu_custom_call.1
= control target key start
LH: loop header
LB: loop body
LE: loop exit
PB: predicated region body
PF: predicated region fallthrough
CT: control target
= control target key end

     0   :  { %vm87_vm0 = vcmask 89088   ;;  %v941_v3 = vmov 0   ;;  %vm335_vm1 = vcmask 261120   ;;  %vm736_vm2 = vcmask 1041409   ;;  %s1335_s0 = inlined_call_operand.vmem [shape: f32[256,11], index: 0, kind: input, shape index: {}]   ;;  %s1336_s1 = inlined_call_operand.vmem [shape: f32[32,11], index: 1, kind: input, shape index: {}]   ;;  %s1337_s2 = inlined_call_operand.vmem [shape: f32[32,1], index: 2, kind: input, shape index: {}]   ;;  %s1338_s4 = inlined_call_operand.vmem [shape: f32[32,1], index: 4, kind: input, shape index: {}]   ;;  %s1339_s6 = inlined_call_operand.vmem [shape: f32[32,1], index: 6, kind: input, shape index: {}]   ;;  %s1340_s3 = inlined_call_operand.vmem [shape: bf16[32,32], index: 3, kind: input, shape index: {}]   ;;  %s1341_s5 = inlined_call_operand.vmem [shape: bf16[32,32], index: 5, kind: input, shape index: {}]   ;;  %s1342_s7 = inlined_call_operand.vmem [shape: f32[2,32,8], index: 7, kind: output, shape index: {}]  }
   0x1   :  { %v58_v0 = vld [vmem:[%s1335_s0 + $0xf8] sm:$0xff]  ;;  %v57_v2 = vld [vmem:[%s1335_s0 + $0xf0] sm:$0xff]  ;;  %935 = vset.pattern.permute.xlu0 %v941_v3  ;;  %936 = vset.pattern.permute.xlu1 %v941_v3  ;;  %v56_v5 = vld [vmem:[%s1335_s0 + $0xe8] sm:$0xff]  ;;  %vm738_vm3 = vcmask 1042434   ;;  %vm740_vm4 = vcmask 1043459   ;;  %vm742_vm5 = vcmask 1044484  }
   0x2   :  { %v42_v1 = vld [vmem:[%s1335_s0 + $0x78] sm:$0xff]  ;;  %893 = vmatprep.subr.msk.mxu0 %vm87_vm0, %v58_v0  ;;  %374 = vmatprep.mubr.bf16.mxu1 %v941_v3  ;;  %v41_v4 = vld [vmem:[%s1335_s0 + $0x70] sm:$0xff]  ;;  %v40_v6 = vld [vmem:[%s1335_s0 + $0x68] sm:$0xff]  ;;  %vm744_vm6 = vcmask 1045509   ;;  %vm746_vm7 = vcmask 1046534   ;;  %vm748_vm8 = vcmask 1047559  }
   0x3   :  { %894 = vmatpush3.xpose.msk.msra.mxu0 %vm87_vm0, %v42_v1  ;;  %v55_v7 = vld [vmem:[%s1335_s0 + $0xe0] sm:$0xff]  ;;  %v54_v10 = vld [vmem:[%s1335_s0 + $0xd8] sm:$0xff]  ;;  %v65_v11 = vld [vmem:[%s1337_s2 + $0x10] sm:$0xff]  ;;  %vm783_vm9 = vcmask 64512  }
   0x4   :  { %895 = vmatprep.subr.msk.mxu0 %vm87_vm0, %v57_v2  ;;  %v1015_v8 = vld [vmem:[%s1336_s1] sm:$0xff]  ;;  %79 = vperm.xlu0 %935, %v65_v11   ;;  %v66_v13 = vld [vmem:[%s1337_s2 + $0x18] sm:$0xff]  ;;  %v64_v14 = vld [vmem:[%s1337_s2 + $0x8] sm:$0xff] }
   0x5   :  { %v39_v9 = vld [vmem:[%s1335_s0 + $0x60] sm:$0xff]  ;;  %925 = vmatprep.mubr.msk.f32.mxu0 %vm87_vm0, %v1015_v8  ;;  %v38_v15 = vld [vmem:[%s1335_s0 + $0x58] sm:$0xff]  ;;  %v53_v16 = vld [vmem:[%s1335_s0 + $0xd0] sm:$0xff] }
   0x6   :  { %v63_v12 = vld [vmem:[%s1337_s2] sm:$0xff]  ;;  %v303_v17 = vld [vmem:[%s1338_s4 + $0x10] sm:$0xff]  ;;  %v304_v18 = vld [vmem:[%s1338_s4 + $0x18] sm:$0xff] }
   0x7   :  { %896 = vmatpush3.xpose.msk.msra.mxu0 %vm87_vm0, %v41_v4  ;;  %69 = vperm.xlu1 %936, %v63_v12   ;;  %v37_v19 = vld [vmem:[%s1335_s0 + $0x50] sm:$0xff]  ;;  %v52_v20 = vld [vmem:[%s1335_s0 + $0xc8] sm:$0xff]  ;;  %v301_v21 = vld [vmem:[%s1338_s4] sm:$0xff] }
   0x8   :  { %897 = vmatprep.subr.msk.mxu0 %vm87_vm0, %v56_v5  ;;  %84 = vperm.xlu0 %935, %v66_v13   ;;  %v302_v22 = vld [vmem:[%s1338_s4 + $0x8] sm:$0xff]  ;;  %v51_v24 = vld [vmem:[%s1335_s0 + $0xc0] sm:$0xff]  ;;  %v50_v28 = vld [vmem:[%s1335_s0 + $0xb8] sm:$0xff] }
   0x9   :  { %v36_v23 = vld [vmem:[%s1335_s0 + $0x48] sm:$0xff]  ;;  %v411_v25 = vld [vmem:[%s1339_s6] sm:$0xff]  ;;  %v413_v29 = vld [vmem:[%s1339_s6 + $0x10] sm:$0xff] }
   0xa   :  { %v412_v26 = vld [vmem:[%s1339_s6 + $0x8] sm:$0xff]  ;;  %v35_v27 = vld [vmem:[%s1335_s0 + $0x40] sm:$0xff]  ;;  %v414_v30 = vld [vmem:[%s1339_s6 + $0x18] sm:$0xff] }
   0xb   :  { %898 = vmatpush3.xpose.msk.msra.mxu0 %vm87_vm0, %v40_v6  ;;  %74 = vperm.xlu1 %936, %v64_v14   ;;  %v34_v31 = vld [vmem:[%s1335_s0 + $0x38] sm:$0xff]  ;;  %v49_v32 = vld [vmem:[%s1335_s0 + $0xb0] sm:$0xff]  ;;  %v48_v34 = vld [vmem:[%s1335_s0 + $0xa8] sm:$0xff] }
   0xc   :  { %899 = vmatprep.subr.msk.mxu0 %vm87_vm0, %v55_v7  ;;  %317 = vperm.xlu0 %935, %v303_v17   ;;  %v33_v33 = vld [vmem:[%s1335_s0 + $0x30] sm:$0xff]  ;;  %v32_v35 = vld [vmem:[%s1335_s0 + $0x28] sm:$0xff]  ;;  %v47_v36 = vld [vmem:[%s1335_s0 + $0xa0] sm:$0xff] }
   0xd   :  { %v31_v37 = vld [vmem:[%s1335_s0 + $0x20] sm:$0xff]  ;;  %v46_v38 = vld [vmem:[%s1335_s0 + $0x98] sm:$0xff]  ;;  %v45_v40 = vld [vmem:[%s1335_s0 + $0x90] sm:$0xff] }
   0xe   :  { %v30_v39 = vld [vmem:[%s1335_s0 + $0x18] sm:$0xff]  ;;  %v29_v41 = vld [vmem:[%s1335_s0 + $0x10] sm:$0xff]  ;;  %v44_v42 = vld [vmem:[%s1335_s0 + $0x88] sm:$0xff] }
   0xf   :  { %900 = vmatpush3.xpose.msk.msra.mxu0 %vm87_vm0, %v39_v9  ;;  %322 = vperm.xlu1 %936, %v304_v18   ;;  %v28_v43 = vld [vmem:[%s1335_s0 + $0x8] sm:$0xff]  ;;  %v43_v44 = vld [vmem:[%s1335_s0 + $0x80] sm:$0xff]  ;;  %v61_v47 = vld [vmem:[%s1336_s1 + $0x10] sm:$0xff] }
  0x10   :  { %901 = vmatprep.subr.msk.mxu0 %vm87_vm0, %v54_v10  ;;  %307 = vperm.xlu0 %935, %v301_v21   ;;  %v27_v45 = vld [vmem:[%s1335_s0] sm:$0xff]  ;;  %v60_v46 = vld [vmem:[%s1336_s1 + $0x8] sm:$0xff]  ;;  %v62_v48 = vld [vmem:[%s1336_s1 + $0x18] sm:$0xff] }
  0x11   :  { %v937_v18 = vld [vmem:[%s1340_s3] sm:$0xff]  }
  0x13   :  { %902 = vmatpush3.xpose.msk.msra.mxu0 %vm87_vm0, %v38_v15  ;;  %312 = vperm.xlu1 %936, %v302_v22  }
  0x14   :  { %903 = vmatprep.subr.msk.mxu0 %vm87_vm0, %v53_v16  ;;  %417 = vperm.xlu0 %935, %v411_v25  }
  0x17   :  { %904 = vmatpush3.xpose.msk.msra.mxu0 %vm87_vm0, %v37_v19  ;;  %422 = vperm.xlu1 %936, %v412_v26   ;;  %v938_v19 = vld [vmem:[%s1340_s3 + $0x8] sm:$0xff]  }
  0x18   :  { %905 = vmatprep.subr.msk.mxu0 %vm87_vm0, %v52_v20  ;;  %427 = vperm.xlu0 %935, %v413_v29  }
  0x1b   :  { %906 = vmatpush3.xpose.msk.msra.mxu0 %vm87_vm0, %v36_v23  ;;  %432 = vperm.xlu1 %936, %v414_v30  }
  0x1c   :  { %907 = vmatprep.subr.msk.mxu0 %vm87_vm0, %v51_v24 }
  0x1f   :  { %908 = vmatpush3.xpose.msk.msra.mxu0 %vm87_vm0, %v35_v27 }
  0x20   :  { %909 = vmatprep.subr.msk.mxu0 %vm87_vm0, %v50_v28 }
  0x23   :  { %910 = vmatpush3.xpose.msk.msra.mxu0 %vm87_vm0, %v34_v31 }
  0x24   :  { %911 = vmatprep.subr.msk.mxu0 %vm87_vm0, %v49_v32 }
  0x27   :  { %912 = vmatpush3.xpose.msk.msra.mxu0 %vm87_vm0, %v33_v33 }
  0x28   :  { %913 = vmatprep.subr.msk.mxu0 %vm87_vm0, %v48_v34 }
  0x2b   :  { %914 = vmatpush3.xpose.msk.msra.mxu0 %vm87_vm0, %v32_v35 }
  0x2c   :  { %915 = vmatprep.subr.msk.mxu0 %vm87_vm0, %v47_v36 }
  0x2f   :  { %916 = vmatpush3.xpose.msk.msra.mxu0 %vm87_vm0, %v31_v37 }
  0x30   :  { %917 = vmatprep.subr.msk.mxu0 %vm87_vm0, %v46_v38 }
  0x33   :  { %918 = vmatpush3.xpose.msk.msra.mxu0 %vm87_vm0, %v30_v39 }
  0x34   :  { %919 = vmatprep.subr.msk.mxu0 %vm87_vm0, %v45_v40 }
  0x37   :  { %920 = vmatpush3.xpose.msk.msra.mxu0 %vm87_vm0, %v29_v41 }
  0x38   :  { %921 = vmatprep.subr.msk.mxu0 %vm87_vm0, %v44_v42 }
  0x3b   :  { %922 = vmatpush3.xpose.msk.msra.mxu0 %vm87_vm0, %v28_v43 }
  0x3c   :  { %923 = vmatprep.subr.msk.mxu0 %vm87_vm0, %v43_v44 }
  0x3f   :  { %924 = vmatpush3.xpose.msk.msra.mxu0 %vm87_vm0, %v27_v45 }
  0x42   :  { %926 = vmatmul.mubr.msk.f32.vlgmr.msra.gmra.mxu0 %vm87_vm0, %v1015_v8 }
  0x43   :  { %927 = vmatprep.mubr.msk.f32.mxu0 %vm87_vm0, %v60_v46 }
  0x46   :  { %928 = vmatmul.mubr.msk.f32.gmra.mxu0 %vm87_vm0, %v60_v46 }
  0x47   :  { %929 = vmatprep.mubr.msk.f32.mxu0 %vm87_vm0, %v61_v47 }
  0x4a   :  { %930 = vmatmul.mubr.msk.f32.gmra.mxu0 %vm87_vm0, %v61_v47 }
  0x4b   :  { %931 = vmatprep.mubr.msk.f32.mxu0 %vm87_vm0, %v62_v48 }
  0x4e   :  { %932 = vmatmul.mubr.msk.f32.gmra.mxu0 %vm87_vm0, %v62_v48 }
  0x7f   :  { %v80_v52 = vpop.permute.xlu0 %79 }
  0x82   :  { %v70_v53 = vpop.permute.xlu1 %69 }
  0x83   :  { %v85_v57 = vpop.permute.xlu0 %84 }
  0x86   :  { %v75_v58 = vpop.permute.xlu1 %74 }
  0x87   :  { %v318_v25 = vpop.permute.xlu0 %317 }
  0x8a   :  { %v323_v23 = vpop.permute.xlu1 %322 }
  0x8b   :  { %v308_v33 = vpop.permute.xlu0 %307 }
  0x8e   :  { %v313_v28 = vpop.permute.xlu1 %312 }
 0x102   :  { %v262_v49 = vpop.f32.mrf.mxu0 }
 0x103   :  { %v1191_v9 = vadd.f32 %v262_v49, %v70_v53 }
 0x104   :  { %v264_v50 = vpop.f32.mrf.mxu0 }
 0x105   :  { %v1181_v1 = vadd.f32 %v264_v50, %v70_v53  ;;  %v285_v16 = vmax.f32 %v1191_v9, 0.0  ;;  %v940_v53 = vld [vmem:[%s1341_s5 + $0x8] sm:$0xff]  }
 0x106   :  { %v268_v51 = vpop.f32.mrf.mxu0 }
 0x107   :  { %v1185_v4 = vadd.f32 %v268_v51, %v75_v58  ;;  %v286_v11 = vmax.f32 %v1181_v1, 0.0 }
 0x108   :  { %v270_v54 = vpop.f32.mrf.mxu0 }
 0x109   :  { %v1173_v60 = vadd.f32 %v270_v54, %v75_v58  ;;  %v287_v13 = vmax.f32 %v1185_v4, 0.0  ;;  %v418_v54 = vpop.permute.xlu0 %417 }
 0x10a   :  { %v274_v55 = vpop.f32.mrf.mxu0 }
 0x10b   :  { %v1179_v63 = vadd.f32 %v274_v55, %v80_v52  ;;  %v288_v6 = vmax.f32 %v1173_v60, 0.0  ;;  %v297_v17 = vpack.c.bf16 %v287_v13, %v285_v16 }
 0x10c   :  { %v276_v56 = vpop.f32.mrf.mxu0 }
 0x10d   :  { %v1175_v61 = vadd.f32 %v276_v56, %v80_v52  ;;  %v289_v10 = vmax.f32 %v1179_v63, 0.0  ;;  %v298_v15 = vpack.c.bf16 %v288_v6, %v286_v11  ;;  %v939_v52 = vld [vmem:[%s1341_s5] sm:$0xff]  }
 0x10e   :  { %v280_v59 = vpop.f32.mrf.mxu0 }
 0x10f   :  { %v1177_v62 = vadd.f32 %v280_v59, %v85_v57  ;;  %v290_v7 = vmax.f32 %v1175_v61, 0.0 }
 0x110   :  { %v282_v0 = vpop.f32.mrf.mxu0 }
 0x111   :  { %v1183_v2 = vadd.f32 %v282_v0, %v85_v57  ;;  %v291_v5 = vmax.f32 %v1177_v62, 0.0  ;;  %v423_v0 = vpop.permute.xlu1 %422 }
 0x113   :  { %v292_v8 = vmax.f32 %v1183_v2, 0.0  ;;  %v299_v14 = vpack.c.bf16 %v291_v5, %v289_v10 }
 0x115   :  { %v300_v12 = vpack.c.bf16 %v292_v8, %v290_v7 }
 0x117   :  { %354 = vmatprep.subr.bf16.mxu1 %v300_v12 }
 0x118   :  { %355 = vmatpush1.bf16.msra.mxu1 %v299_v14 }
 0x119   :  { %356 = vmatprep.subr.bf16.mxu1 %v298_v15 }
 0x11c   :  { %357 = vmatpush1.bf16.msra.mxu1 %v297_v17 }
 0x11f   :  { %883 = vmatmul.mubr.msk.bf16.vlgmr.msra.gmra.mxu1 %vm335_vm1, %v937_v18 }
 0x120   :  { %384 = vmatprep.mubr.bf16.mxu1 %v941_v3 }
 0x127   :  { %884 = vmatmul.mubr.msk.bf16.gmra.mxu1 %vm335_vm1, %v938_v19 }
 0x128   :  { %483 = vmatprep.mubr.bf16.mxu1 %v941_v3 }
 0x1df   :  { %v376_v20 = vpop.f32.mrf.mxu1 }
 0x1e0   :  { %v377_v43 = vadd.f32 %v376_v20, %v308_v33  ;;  %v428_v20 = vpop.permute.xlu0 %427 }
 0x1e1   :  { %v378_v21 = vpop.f32.mrf.mxu1 }
 0x1e2   :  { %v379_v36 = vadd.f32 %v378_v21, %v308_v33  ;;  %v395_v50 = vmax.f32 %v377_v43, 0.0 }
 0x1e3   :  { %v380_v22 = vpop.f32.mrf.mxu1 }
 0x1e4   :  { %v381_v38 = vadd.f32 %v380_v22, %v313_v28  ;;  %v396_v45 = vmax.f32 %v379_v36, 0.0 }
 0x1e5   :  { %v382_v24 = vpop.f32.mrf.mxu1 }
 0x1e6   :  { %v383_v30 = vadd.f32 %v382_v24, %v313_v28  ;;  %v397_v47 = vmax.f32 %v381_v38, 0.0 }
 0x1e7   :  { %v386_v26 = vpop.f32.mrf.mxu1 }
 0x1e8   :  { %v387_v34 = vadd.f32 %v386_v26, %v318_v25  ;;  %v398_v40 = vmax.f32 %v383_v30, 0.0  ;;  %v407_v51 = vpack.c.bf16 %v397_v47, %v395_v50  ;;  %v433_v26 = vpop.permute.xlu1 %432 }
 0x1e9   :  { %v388_v27 = vpop.f32.mrf.mxu1 }
 0x1ea   :  { %v389_v31 = vadd.f32 %v388_v27, %v318_v25  ;;  %v399_v44 = vmax.f32 %v387_v34, 0.0  ;;  %v408_v49 = vpack.c.bf16 %v398_v40, %v396_v45 }
 0x1eb   :  { %v390_v29 = vpop.f32.mrf.mxu1 }
 0x1ec   :  { %v391_v32 = vadd.f32 %v390_v29, %v323_v23  ;;  %v400_v41 = vmax.f32 %v389_v31, 0.0 }
 0x1ed   :  { %v392_v35 = vpop.f32.mrf.mxu1 }
 0x1ee   :  { %v393_v37 = vadd.f32 %v392_v35, %v323_v23  ;;  %v401_v39 = vmax.f32 %v391_v32, 0.0 }
 0x1f0   :  { %v402_v42 = vmax.f32 %v393_v37, 0.0  ;;  %v409_v48 = vpack.c.bf16 %v401_v39, %v399_v44 }
 0x1f2   :  { %v410_v46 = vpack.c.bf16 %v402_v42, %v400_v41 }
 0x1f4   :  { %463 = vmatprep.subr.bf16.mxu1 %v410_v46 }
 0x1f5   :  { %464 = vmatpush1.bf16.msra.mxu1 %v409_v48 }
 0x1f6   :  { %465 = vmatprep.subr.bf16.mxu1 %v408_v49 }
 0x1f9   :  { %466 = vmatpush1.bf16.msra.mxu1 %v407_v51 }
 0x1fc   :  { %887 = vmatmul.mubr.msk.bf16.vlgmr.msra.gmra.mxu1 %vm335_vm1, %v939_v52 }
 0x1fd   :  { %493 = vmatprep.mubr.bf16.mxu1 %v941_v3 }
 0x204   :  { %888 = vmatmul.mubr.msk.bf16.gmra.mxu1 %vm335_vm1, %v940_v53 }
 0x2bc   :  { %v485_v55 = vpop.f32.mrf.mxu1 }
 0x2bd   :  { %v486_v56 = vadd.f32 %v485_v55, %v418_v54 }
 0x2be   :  { %v487_v57 = vpop.f32.mrf.mxu1 }
 0x2bf   :  { %v504_v58 = vadd.f32 %v486_v56, %v285_v16  ;;  %v488_v59 = vadd.f32 %v487_v57, %v418_v54 }
 0x2c0   :  { %v489_v9 = vpop.f32.mrf.mxu1 }
 0x2c1   :  { %v512_v12 = vmax.f32 %v504_v58, 0.0  ;;  %v505_v14 = vadd.f32 %v488_v59, %v286_v11  ;;  %v490_v15 = vadd.f32 %v489_v9, %v423_v0 }
 0x2c2   :  { %v491_v3 = vpop.f32.mrf.mxu1 }
 0x2c3   :  { %v513_v17 = vmax.f32 %v505_v14, 0.0  ;;  %v506_v18 = vadd.f32 %v490_v15, %v287_v13  ;;  %v492_v19 = vadd.f32 %v491_v3, %v423_v0  ;;  %520 = vxpose.xlu0.b32.start [1/4] (short) %v512_v12, 128 }
 0x2c4   :  { %v495_v21 = vpop.f32.mrf.mxu1 }
 0x2c5   :  { %v514_v22 = vmax.f32 %v506_v18, 0.0  ;;  %v507_v16 = vadd.f32 %v492_v19, %v288_v6  ;;  %v496_v23 = vadd.f32 %v495_v21, %v428_v20  ;;  %552 = vxpose.xlu1.b32.start [1/4] (short) %v513_v17, 128 }
 0x2c6   :  { %v497_v24 = vpop.f32.mrf.mxu1 }
 0x2c7   :  { %v515_v25 = vmax.f32 %v507_v16, 0.0  ;;  %v508_v1 = vadd.f32 %v496_v23, %v289_v10  ;;  %v498_v11 = vadd.f32 %v497_v24, %v428_v20  ;;  %521 = vxpose.xlu0.b32.cont [2/4] (short) %v514_v22, 128 }
 0x2c8   :  { %v499_v4 = vpop.f32.mrf.mxu1 }
 0x2c9   :  { %v516_v13 = vmax.f32 %v508_v1, 0.0  ;;  %v509_v27 = vadd.f32 %v498_v11, %v290_v7  ;;  %v500_v28 = vadd.f32 %v499_v4, %v433_v26  ;;  %553 = vxpose.xlu1.b32.cont [2/4] (short) %v515_v25, 128 }
 0x2ca   :  { %v501_v29 = vpop.f32.mrf.mxu1 }
 0x2cb   :  { %v517_v60 = vmax.f32 %v509_v27, 0.0  ;;  %v510_v6 = vadd.f32 %v500_v28, %v291_v5  ;;  %v502_v30 = vadd.f32 %v501_v29, %v433_v26  ;;  %522 = vxpose.xlu0.b32.cont [3/4] (short) %v516_v13, 128 }
 0x2cd   :  { %v518_v31 = vmax.f32 %v510_v6, 0.0  ;;  %v511_v63 = vadd.f32 %v502_v30, %v292_v8  ;;  %554 = vxpose.xlu1.b32.cont [3/4] (short) %v517_v60, 128 }
 0x2cf   :  { %v519_v10 = vmax.f32 %v511_v63, 0.0  ;;  %523 = vxpose.xlu0.b32.end [4/4] (short) %v518_v31, 128 }
 0x2d1   :  { %555 = vxpose.xlu1.b32.end [4/4] (short) %v519_v10, 128 }
 0x33f   :  { %v536_v32 = vpop.trf.xlu0 }
 0x340   :  { %v584_v2 = vsel %vm335_vm1, %v536_v32, -inf }
 0x341   :  { %v568_v61 = vpop.trf.xlu1 }
 0x342   :  { %v656_v45 = vsel %vm335_vm1, %v568_v61, -inf }
 0x343   :  { %v537_v7 = vpop.trf.xlu0 }
 0x344   :  { %v585_v39 = vsel %vm335_vm1, %v537_v7, -inf }
 0x345   :  { %v569_v33 = vpop.trf.xlu1  ;;  %v586_v41 = vmax.f32 %v584_v2, %v585_v39 }
 0x346   :  { %v657_v43 = vsel %vm335_vm1, %v569_v33, -inf }
 0x347   :  { %v538_v34 = vpop.trf.xlu0  ;;  %v587_v46 = vrot.slane %v586_v41, 4  ;;  %v658_v47 = vmax.f32 %v656_v45, %v657_v43 }
 0x348   :  { %v593_v52 = vsel %vm335_vm1, %v538_v34, -inf }
 0x349   :  { %v570_v35 = vpop.trf.xlu1  ;;  %v588_v51 = vmax.f32 %v586_v41, %v587_v46  ;;  %v659_v53 = vrot.slane %v658_v47, 4 }
 0x34a   :  { %v665_v0 = vsel %vm335_vm1, %v570_v35, -inf }
 0x34b   :  { %v539_v36 = vpop.trf.xlu0  ;;  %v589_v59 = vrot.slane %v588_v51, 2  ;;  %v660_v9 = vmax.f32 %v658_v47, %v659_v53 }
 0x34c   :  { %v594_v49 = vsel %vm335_vm1, %v539_v36, -inf }
 0x34d   :  { %v571_v37 = vpop.trf.xlu1  ;;  %v595_v54 = vmax.f32 %v593_v52, %v594_v49  ;;  %v1254_v19 = vmax.f32 %v588_v51, %v589_v59  ;;  %v661_v22 = vrot.slane %v660_v9, 2 }
 0x34e   :  { %v666_v56 = vsel %vm335_vm1, %v571_v37, -inf }
 0x34f   :  { %v540_v62 = vpop.trf.xlu0  ;;  %v596_v12 = vrot.slane %v595_v54, 4  ;;  %v667_v14 = vmax.f32 %v665_v0, %v666_v56  ;;  %v591_v45 = vrot.slane %v1254_v19, 1 }
 0x350   :  { %v602_v15 = vsel %vm335_vm1, %v540_v62, -inf  ;;  %v662_v62 = vmax.f32 %v660_v9, %v661_v22 }
 0x351   :  { %v572_v5 = vpop.trf.xlu1  ;;  %v597_v16 = vmax.f32 %v595_v54, %v596_v12  ;;  %v668_v23 = vrot.slane %v667_v14, 4 }
 0x352   :  { %v674_v1 = vsel %vm335_vm1, %v572_v5, -inf }
 0x353   :  { %v541_v38 = vpop.trf.xlu0  ;;  %v669_v10 = vmax.f32 %v667_v14, %v668_v23  ;;  %v598_v5 = vrot.slane %v597_v16, 2 }
 0x354   :  { %v603_v57 = vsel %vm335_vm1, %v541_v38, -inf }
 0x355   :  { %v573_v40 = vpop.trf.xlu1  ;;  %v604_v17 = vmax.f32 %v602_v15, %v603_v57  ;;  %v670_v41 = vrot.slane %v669_v10, 2  ;;  %v1271_v49 = vmax.f32 %v597_v16, %v598_v5  ;;  %v592_v16 = vmax.f32 %v1254_v19, %v591_v45 }
 0x356   :  { %v675_v20 = vsel %vm335_vm1, %v573_v40, -inf }
 0x357   :  { %v542_v8 = vpop.trf.xlu0  ;;  %v605_v11 = vrot.slane %v604_v17, 4  ;;  %v676_v13 = vmax.f32 %v674_v1, %v675_v20  ;;  %v1275_v57 = vmax.f32 %v669_v10, %v670_v41 }
 0x358   :  { %v611_v26 = vsel %vm335_vm1, %v542_v8, -inf }
 0x359   :  { %v574_v42 = vpop.trf.xlu1  ;;  %v606_v34 = vmax.f32 %v604_v17, %v605_v11  ;;  %v677_v2 = vrot.slane %v676_v13, 4 }
 0x35a   :  { %v683_v6 = vsel %vm335_vm1, %v574_v42, -inf }
 0x35b   :  { %v543_v44 = vpop.trf.xlu0  ;;  %v607_v46 = vrot.slane %v606_v34, 2  ;;  %v678_v53 = vmax.f32 %v676_v13, %v677_v2 }
 0x35c   :  { %v612_v21 = vsel %vm335_vm1, %v543_v44, -inf }
 0x35d   :  { %v575_v48 = vpop.trf.xlu1  ;;  %v613_v27 = vmax.f32 %v611_v26, %v612_v21  ;;  %v608_v12 = vmax.f32 %v606_v34, %v607_v46 }
 0x35e   :  { %v684_v4 = vsel %vm335_vm1, %v575_v48, -inf  ;;  %v663_v48 = vrot.slane %v662_v62, 1 }
 0x35f   :  { %v544_v50 = vpop.trf.xlu0  ;;  %v685_v32 = vmax.f32 %v683_v6, %v684_v4  ;;  %v614_v38 = vrot.slane %v613_v27, 4 }
 0x360   :  { %v620_v28 = vsel %vm335_vm1, %v544_v50, -inf  ;;  %v1280_v23 = vmax.f32 %v662_v62, %v663_v48 }
 0x361   :  { %v576_v55 = vpop.trf.xlu1  ;;  %v686_v42 = vrot.slane %v685_v32, 4  ;;  %v615_v50 = vmax.f32 %v613_v27, %v614_v38  ;;  %v600_v27 = vrot.slane %v1271_v49, 1 }
 0x362   :  { %v692_v61 = vsel %vm335_vm1, %v576_v55, -inf }
 0x363   :  { %v545_v58 = vpop.trf.xlu0  ;;  %v616_v17 = vrot.slane %v615_v50, 2 }
 0x364   :  { %v621_v24 = vsel %vm335_vm1, %v545_v58, -inf  ;;  %v687_v58 = vmax.f32 %v685_v32, %v686_v42  ;;  %v601_v42 = vmax.f32 %v1271_v49, %v600_v27 }
 0x365   :  { %v577_v3 = vpop.trf.xlu1  ;;  %v622_v30 = vmax.f32 %v620_v28, %v621_v24  ;;  %v679_v24 = vrot.slane %v678_v53, 2  ;;  %v672_v28 = vrot.slane %v1275_v57, 1  ;;  %v617_v6 = vmax.f32 %v615_v50, %v616_v17 }
 0x366   :  { %v693_v29 = vsel %vm335_vm1, %v577_v3, -inf  ;;  %v688_v1 = vrot.slane %v687_v58, 2 }
 0x367   :  { %v546_v18 = vpop.trf.xlu0  ;;  %v694_v35 = vmax.f32 %v692_v61, %v693_v29  ;;  %v623_v8 = vrot.slane %v622_v30, 4  ;;  %v609_v29 = vrot.slane %v608_v12, 1  ;;  %v680_v10 = vmax.f32 %v678_v53, %v679_v24 }
 0x368   :  { %v629_v31 = vsel %vm335_vm1, %v546_v18, -inf }
 0x369   :  { %v578_v25 = vpop.trf.xlu1  ;;  %v695_v47 = vrot.slane %v694_v35, 4  ;;  %v624_v54 = vmax.f32 %v622_v30, %v623_v8 }
 0x36a   :  { %v701_v36 = vsel %vm335_vm1, %v578_v25, -inf }
 0x36b   :  { %v547_v60 = vpop.trf.xlu0  ;;  %v696_v14 = vmax.f32 %v694_v35, %v695_v47  ;;  %v625_v25 = vrot.slane %v624_v54, 2 }
 0x36c   :  { %v630_v63 = vsel %vm335_vm1, %v547_v60, -inf }
 0x36d   :  { %v631_v7 = vmax.f32 %v629_v31, %v630_v63  ;;  %v579_v33 = vpop.trf.xlu1  ;;  %v697_v60 = vrot.slane %v696_v14, 2  ;;  %v626_v32 = vmax.f32 %v624_v54, %v625_v25 }
 0x36e   :  { %v702_v37 = vsel %vm335_vm1, %v579_v33, -inf  ;;  %v689_v33 = vmax.f32 %v687_v58, %v688_v1 }
 0x36f   :  { %v703_v39 = vmax.f32 %v701_v36, %v702_v37  ;;  %v548_v40 = vpop.trf.xlu0  ;;  %v632_v43 = vrot.slane %v631_v7, 4  ;;  %v698_v62 = vmax.f32 %v696_v14, %v697_v60 }
 0x370   :  { %v638_v55 = vsel %vm335_vm1, %v548_v40, -inf  ;;  %v618_v40 = vrot.slane %v617_v6, 1  ;;  %v690_v46 = vrot.slane %v689_v33, 1 }
 0x371   :  { %v580_v44 = vpop.trf.xlu1  ;;  %v704_v51 = vrot.slane %v703_v39, 4  ;;  %v633_v59 = vmax.f32 %v631_v7, %v632_v43  ;;  %v681_v43 = vrot.slane %v680_v10, 1  ;;  %v699_v53 = vrot.slane %v698_v62, 1 }
 0x372   :  { %v710_v15 = vsel %vm335_vm1, %v580_v44, -inf  ;;  %v627_v44 = vrot.slane %v626_v32, 1 }
 0x373   :  { %v549_v52 = vpop.trf.xlu0  ;;  %v705_v18 = vmax.f32 %v703_v39, %v704_v51  ;;  %v634_v11 = vrot.slane %v633_v59, 2  ;;  %v673_v51 = vmax.f32 %v1275_v57, %v672_v28 }
 0x374   :  { %v639_v56 = vsel %vm335_vm1, %v549_v52, -inf  ;;  %v610_v52 = vmax.f32 %v608_v12, %v609_v29  ;;  %v628_v49 = vmax.f32 %v626_v32, %v627_v44  ;;  %v700_v12 = vmax.f32 %v698_v62, %v699_v53 }
 0x375   :  { %v640_v0 = vmax.f32 %v638_v55, %v639_v56  ;;  %v581_v9 = vpop.trf.xlu1  ;;  %v706_v30 = vrot.slane %v705_v18, 2  ;;  %v635_v34 = vmax.f32 %v633_v59, %v634_v11  ;;  %v619_v55 = vmax.f32 %v617_v6, %v618_v40 }
 0x376   :  { %v711_v3 = vsel %vm335_vm1, %v581_v9, -inf  ;;  %v682_v9 = vmax.f32 %v680_v10, %v681_v43 }
 0x377   :  { %v641_v20 = vrot.slane %v640_v0, 4  ;;  %v712_v21 = vmax.f32 %v710_v15, %v711_v3  ;;  %v550_v22 = vpop.trf.xlu0  ;;  %v707_v2 = vmax.f32 %v705_v18, %v706_v30  ;;  %v636_v47 = vrot.slane %v635_v34, 1 }
 0x378   :  { %v647_v61 = vsel %vm335_vm1, %v550_v22, -inf  ;;  %v691_v15 = vmax.f32 %v689_v33, %v690_v46 }
 0x379   :  { %v642_v26 = vmax.f32 %v640_v0, %v641_v20  ;;  %v713_v4 = vrot.slane %v712_v21, 4  ;;  %v582_v13 = vpop.trf.xlu1  ;;  %v708_v56 = vrot.slane %v707_v2, 1  ;;  %v737_v0 = vsel %vm736_vm2, %v601_v42, %v592_v16 }
 0x37a   :  { %v719_v38 = vsel %vm335_vm1, %v582_v13, -inf  ;;  %v637_v3 = vmax.f32 %v635_v34, %v636_v47  ;;  %v796_v20 = vsel %vm736_vm2, %v673_v51, %v1280_v23  ;;  %v739_v57 = vsel %vm738_vm3, %v610_v52, %v737_v0 }
 0x37b   :  { %v643_v19 = vrot.slane %v642_v26, 2  ;;  %v714_v31 = vmax.f32 %v712_v21, %v713_v4  ;;  %v551_v63 = vpop.trf.xlu0  ;;  %v709_v22 = vmax.f32 %v707_v2, %v708_v56  ;;  %v741_v1 = vsel %vm740_vm4, %v619_v55, %v739_v57 }
 0x37c   :  { %v648_v7 = vsel %vm335_vm1, %v551_v63, -inf  ;;  %v797_v16 = vsel %vm738_vm3, %v682_v9, %v796_v20 }
 0x37d   :  { %v715_v35 = vrot.slane %v714_v31, 2  ;;  %v649_v36 = vmax.f32 %v647_v61, %v648_v7  ;;  %v583_v37 = vpop.trf.xlu1  ;;  %v644_v5 = vmax.f32 %v642_v26, %v643_v19  ;;  %v743_v26 = vsel %vm742_vm5, %v628_v49, %v741_v1 }
 0x37e   :  { %v720_v39 = vsel %vm335_vm1, %v583_v37, -inf  ;;  %v745_v27 = vsel %vm744_vm6, %v637_v3, %v743_v26  ;;  %v798_v23 = vsel %vm740_vm4, %v691_v15, %v797_v16 }
 0x37f   :  { %v650_v8 = vrot.slane %v649_v36, 4  ;;  %v721_v41 = vmax.f32 %v719_v38, %v720_v39  ;;  %v716_v45 = vmax.f32 %v714_v31, %v715_v35  ;;  %v645_v54 = vrot.slane %v644_v5, 1 }
 0x380   :  { %v799_v29 = vsel %vm742_vm5, %v700_v12, %v798_v23 }
 0x381   :  { %v651_v48 = vmax.f32 %v649_v36, %v650_v8  ;;  %v722_v50 = vrot.slane %v721_v41, 4  ;;  %v717_v14 = vrot.slane %v716_v45, 1  ;;  %v646_v21 = vmax.f32 %v644_v5, %v645_v54 }
 0x382   :  { %v800_v30 = vsel %vm744_vm6, %v709_v22, %v799_v29 }
 0x383   :  { %v652_v58 = vrot.slane %v651_v48, 2  ;;  %v723_v59 = vmax.f32 %v721_v41, %v722_v50  ;;  %v718_v11 = vmax.f32 %v716_v45, %v717_v14  ;;  %v747_v28 = vsel %vm746_vm7, %v646_v21, %v745_v27 }
 0x385   :  { %v653_v17 = vmax.f32 %v651_v48, %v652_v58  ;;  %v724_v18 = vrot.slane %v723_v59, 2  ;;  %v801_v19 = vsel %vm746_vm7, %v718_v11, %v800_v30 }
 0x387   :  { %v654_v24 = vrot.slane %v653_v17, 1  ;;  %v725_v25 = vmax.f32 %v723_v59, %v724_v18 }
 0x389   :  { %v726_v4 = vrot.slane %v725_v25, 1  ;;  %v655_v13 = vmax.f32 %v653_v17, %v654_v24 }
 0x38b   :  { %v749_v60 = vsel %vm748_vm8, %v655_v13, %v747_v28  ;;  %v727_v6 = vmax.f32 %v725_v25, %v726_v4 }
 0x38c   :  { %751 = vxpose.xlu0.b32.start.end [1/1] (short) (narrow) %v749_v60, 32 }
 0x38d   :  { %v802_v31 = vsel %vm748_vm8, %v727_v6, %v801_v19 }
 0x38e   :  { %804 = vxpose.xlu1.b32.start.end [1/1] (short) (narrow) %v802_v31, 32 }
 0x408   :  { %v767_v63 = vpop.trf.xlu0 }
 0x409   :  { %784 = vst.msk [vmem:[%s1342_s7] sm:$0xff] %vm783_vm9, %v767_v63 }
 0x40a   :  { %v820_v10 = vpop.trf.xlu1 }
 0x40b   :  { %889 = vst.msk [vmem:[%s1342_s7 + $0x20] sm:$0xff] %vm783_vm9, %v820_v10 }
 0x40c   :  { %v768_v32 = vpop.trf.xlu0 }
 0x40d   :  { %785 = vst.msk [vmem:[%s1342_s7 + $0x8] sm:$0xff] %vm783_vm9, %v768_v32 }
 0x40e   :  { %v821_v61 = vpop.trf.xlu1 }
 0x40f   :  { %890 = vst.msk [vmem:[%s1342_s7 + $0x28] sm:$0xff] %vm783_vm9, %v821_v61 }
 0x410   :  { %v769_v7 = vpop.trf.xlu0 }
 0x411   :  { %786 = vst.msk [vmem:[%s1342_s7 + $0x10] sm:$0xff] %vm783_vm9, %v769_v7 }
 0x412   :  { %v822_v33 = vpop.trf.xlu1 }
 0x413   :  { %891 = vst.msk [vmem:[%s1342_s7 + $0x30] sm:$0xff] %vm783_vm9, %v822_v33 }
 0x414   :  { %v770_v34 = vpop.trf.xlu0 }
 0x415   :  { %787 = vst.msk [vmem:[%s1342_s7 + $0x18] sm:$0xff] %vm783_vm9, %v770_v34 }
 0x416   :  { %v823_v35 = vpop.trf.xlu1 }
 0x417   :  { %892 = vst.msk [vmem:[%s1342_s7 + $0x38] sm:$0xff] %vm783_vm9, %v823_v35 }

</bundles_post_ra>
